<compile_context>
chip_gen: v7x
topology: tpu7x:2x2x1
jax: 0.10.0
libtpu: 0.0.40
codegen_flags: <defaults>
</compile_context>

<pallas_src>
import functools
import math

import jax
import jax.numpy as jnp
from jax.experimental import pallas as pl
from jax.experimental.pallas import tpu as pltpu


def _round_up(x, m):
    return ((x + m - 1) // m) * m


def dueling_dqn_kernel(state_ref,
                       w1_ref, b1_ref, w2_ref, b2_ref,
                       wh1_ref, bh1_ref, wh2_ref, bh2_ref,
                       q_ref,
                       *, batch, tile_rows):
    f32 = jnp.float32
    bf16 = jnp.bfloat16

    # bf16 activation operands -> native MXU rate; f32 accumulation.
    x = state_ref[...].astype(bf16)

    # Feature layer: Linear(in,128) -> ReLU -> Linear(128,emb) -> ReLU
    h1 = jnp.dot(x, w1_ref[...], preferred_element_type=f32) + b1_ref[...]
    h1 = jnp.maximum(h1, 0.0).astype(bf16)
    feat = jnp.dot(h1, w2_ref[...], preferred_element_type=f32) + b2_ref[...]
    feat = jnp.maximum(feat, 0.0).astype(bf16)

    # Fused value|advantage hidden layer: Linear(emb, 256) -> ReLU
    h = jnp.dot(feat, wh1_ref[...], preferred_element_type=f32) + bh1_ref[...]
    h = jnp.maximum(h, 0.0).astype(bf16)

    # Fused block-structured head: (TB,256) @ (256,128)
    #   column 0      -> V(s)
    #   columns 1..A  -> A(s, a)
    #   columns A+1.. -> exactly zero (zero weights / zero bias)
    hq = jnp.dot(h, wh2_ref[...], preferred_element_type=f32) + bh2_ref[...]

    values = hq[:, 0:1]            # (TB, 1) value column
    q = values + hq                # cols 1..A hold V + A (lane-dense)

    rows_local = jax.lax.broadcasted_iota(jnp.int32, hq.shape, 0)
    cols = jax.lax.broadcasted_iota(jnp.int32, hq.shape, 1)
    rows_global = rows_local + pl.program_id(0) * tile_rows

    # Per-tile masked advantage sum: exclude padded batch rows and the value
    # column; columns > A are exact zeros so no upper-bound mask is needed.
    adv_mask = (rows_global < batch) & (cols >= 1)
    tile_sum = jnp.sum(jnp.where(adv_mask, hq, 0.0))

    # Stash the tile's advantage sum in lane 127 of the tile's first row
    # (that lane is never part of the real Q slice; the wrapper reads it back).
    stash = (rows_local == 0) & (cols == 127)
    q_ref[...] = jnp.where(stash, tile_sum, q)


def pack_params(p, output_dim):
    """Fuse the value/advantage streams; weights bf16, biases f32."""
    A = output_dim
    assert A <= 126, "output_dim must leave lane 127 free in the padded head"
    bf16 = jnp.bfloat16

    wh1 = jnp.concatenate([p["wv1"], p["wa1"]], axis=1)     # (emb, 256)
    bh1 = jnp.concatenate([p["bv1"], p["ba1"]], axis=1)     # (1, 256)

    wh2 = jnp.zeros((256, 128), jnp.float32)
    wh2 = wh2.at[:128, 0:1].set(p["wv2"])                   # value head -> column 0
    wh2 = wh2.at[128:, 1:1 + A].set(p["wa2"])               # advantage head -> cols 1..A
    bh2 = jnp.zeros((1, 128), jnp.float32)
    bh2 = bh2.at[:, 0:1].set(p["bv2"])
    bh2 = bh2.at[:, 1:1 + A].set(p["ba2"])

    return dict(
        w1=p["w1"].astype(bf16), b1=p["b1"],
        w2=p["w2"].astype(bf16), b2=p["b2"],
        wh1=wh1.astype(bf16), bh1=bh1,
        wh2=wh2.astype(bf16), bh2=bh2,
    )


def dueling_dqn_forward(state, packed, output_dim):
    B, input_dim = state.shape
    A = output_dim
    assert A <= 126
    emb = packed["w2"].shape[1]

    # Batch tiling: one tile up to 512 rows; above that, >=2 tiles (engages
    # both TensorCores on v7x via the "parallel" grid axis), capped at 1024
    # rows per tile so per-step overhead is amortized.
    B8 = _round_up(B, 8)
    if B8 <= 512:
        TB = B8
    else:
        TB = min(1024, _round_up((B8 + 1) // 2, 8))
    B_pad = _round_up(B8, TB)
    nt = B_pad // TB

    state_f32 = state.astype(jnp.float32)
    if B_pad != B:
        # Only the remainder tile is padded; padded rows are masked out of the
        # advantage sum inside the kernel and sliced off the output.
        state_f32 = jnp.pad(state_f32, ((0, B_pad - B), (0, 0)))

    weights = (packed["w1"], packed["b1"], packed["w2"], packed["b2"],
               packed["wh1"], packed["bh1"], packed["wh2"], packed["bh2"])

    def resident(arr):
        # Constant index_map -> DMA'd once, stays resident in VMEM across
        # grid steps (each core gets its own copy under megacore sharding).
        nd = arr.ndim
        return pl.BlockSpec(arr.shape, lambda i, _nd=nd: (0,) * _nd)

    kernel = functools.partial(dueling_dqn_kernel, batch=B, tile_rows=TB)

    flops = 2 * B_pad * (input_dim * 128 + 128 * emb + emb * 256 + 256 * 128)
    bytes_accessed = (B_pad * input_dim * 4
                      + sum(int(a.size) * a.dtype.itemsize for a in weights)
                      + B_pad * 128 * 4)

    qpad = pl.pallas_call(
        kernel,
        out_shape=jax.ShapeDtypeStruct((B_pad, 128), jnp.float32),
        grid_spec=pltpu.PrefetchScalarGridSpec(
            num_scalar_prefetch=0,
            grid=(nt,),
            in_specs=[pl.BlockSpec((TB, input_dim), lambda i: (i, 0))]
                     + [resident(a) for a in weights],
            out_specs=pl.BlockSpec((TB, 128), lambda i: (i, 0)),
        ),
        compiler_params=pltpu.CompilerParams(dimension_semantics=("parallel",)),
        cost_estimate=pl.CostEstimate(flops=flops, transcendentals=0,
                                      bytes_accessed=bytes_accessed),
    )(state_f32, *weights)

    # Global dueling combine: q = V + (A - mean(A)).  The mean couples every
    # batch tile, so the scalar subtraction is finished here from the per-tile
    # sums stashed at lane 127 of each tile's first row.
    adv_mean = qpad[0::TB, 127].sum() * (1.0 / (B * A))
    return qpad[:B, 1:1 + A] - adv_mean


def init_params(key, input_dim, output_dim, embedding_dimension=128):
    """Deterministic synthetic init (uniform like torch.nn.Linear default).

    Weights are snapped to bf16-representable values so the kernel's bf16
    weight storage is lossless relative to the f32 reference.
    """
    def linear(key, fan_in, fan_out):
        k_w, k_b = jax.random.split(key)
        bound = 1.0 / math.sqrt(fan_in)
        w = jax.random.uniform(k_w, (fan_in, fan_out), jnp.float32, -bound, bound)
        w = w.astype(jnp.bfloat16).astype(jnp.float32)
        b = jax.random.uniform(k_b, (1, fan_out), jnp.float32, -bound, bound)
        return w, b

    ks = jax.random.split(key, 6)
    w1, b1 = linear(ks[0], input_dim, 128)
    w2, b2 = linear(ks[1], 128, embedding_dimension)
    wv1, bv1 = linear(ks[2], embedding_dimension, 128)
    wv2, bv2 = linear(ks[3], 128, 1)
    wa1, ba1 = linear(ks[4], embedding_dimension, 128)
    wa2, ba2 = linear(ks[5], 128, output_dim)
    return dict(w1=w1, b1=b1, w2=w2, b2=b2,
                wv1=wv1, bv1=bv1, wv2=wv2, bv2=bv2,
                wa1=wa1, ba1=ba1, wa2=wa2, ba2=ba2)


def dueling_dqn_ref(state, p):
    hp = jax.lax.Precision.HIGHEST
    mm = lambda a, b: jnp.dot(a, b, precision=hp)
    relu = lambda x: jnp.maximum(x, 0.0)
    feat = relu(mm(relu(mm(state, p["w1"]) + p["b1"]), p["w2"]) + p["b2"])
    values = mm(relu(mm(feat, p["wv1"]) + p["bv1"]), p["wv2"]) + p["bv2"]
    adv = mm(relu(mm(feat, p["wa1"]) + p["ba1"]), p["wa2"]) + p["ba2"]
    return values + (adv - jnp.mean(adv))


if __name__ == "__main__":
    B, input_dim, output_dim, emb = 4, 16, 8, 128

    key = jax.random.PRNGKey(0)
    k_state, k_params = jax.random.split(key)
    state = jax.random.normal(k_state, (B, input_dim), jnp.float32)
    params = init_params(k_params, input_dim, output_dim, emb)
    packed = pack_params(params, output_dim)

    out = dueling_dqn_forward(state, packed, output_dim)
    out = jax.block_until_ready(out)

    ref = dueling_dqn_ref(state, params)
    assert out.shape == (B, output_dim)
    max_err = float(jnp.max(jnp.abs(out - ref)))
    # bf16 activation operands on the MXU (f32 accumulation) -> bf16-regime tolerance.
    assert jnp.allclose(out, ref, atol=2e-2, rtol=2e-2), f"mismatch vs reference: {max_err}"

    print("KERNEL_OK")
</pallas_src>

<mosaic_0001>
module attributes {stable_mosaic.version = 11 : i64} {
  func.func @dueling_dqn_kernel(%arg0: i32, %arg1: memref<8x16xf32, #tpu.memory_space<vmem>>, %arg2: memref<16x128xbf16, #tpu.memory_space<vmem>>, %arg3: memref<1x128xf32, #tpu.memory_space<vmem>>, %arg4: memref<128x128xbf16, #tpu.memory_space<vmem>>, %arg5: memref<1x128xf32, #tpu.memory_space<vmem>>, %arg6: memref<128x256xbf16, #tpu.memory_space<vmem>>, %arg7: memref<1x256xf32, #tpu.memory_space<vmem>>, %arg8: memref<256x128xbf16, #tpu.memory_space<vmem>>, %arg9: memref<1x128xf32, #tpu.memory_space<vmem>>, %arg10: memref<8x128xf32, #tpu.memory_space<vmem>>) attributes {dimension_semantics = [#tpu.dimension_semantics<parallel>], iteration_bounds = array<i64: 1>, scalar_prefetch = 0 : i64, scratch_operands = 0 : i64, tpu.core_type = #tpu.core_type<tc>, window_params = [{transform_indices = @transform_0, window_bounds = array<i64: 8, 16>}, {pipeline_mode = #tpu.pipeline_mode<synchronous>, transform_indices = @transform_1, window_bounds = array<i64: 16, 128>}, {pipeline_mode = #tpu.pipeline_mode<synchronous>, transform_indices = @transform_2, window_bounds = array<i64: 1, 128>}, {pipeline_mode = #tpu.pipeline_mode<synchronous>, transform_indices = @transform_3, window_bounds = array<i64: 128, 128>}, {pipeline_mode = #tpu.pipeline_mode<synchronous>, transform_indices = @transform_4, window_bounds = array<i64: 1, 128>}, {pipeline_mode = #tpu.pipeline_mode<synchronous>, transform_indices = @transform_5, window_bounds = array<i64: 128, 256>}, {pipeline_mode = #tpu.pipeline_mode<synchronous>, transform_indices = @transform_6, window_bounds = array<i64: 1, 256>}, {pipeline_mode = #tpu.pipeline_mode<synchronous>, transform_indices = @transform_7, window_bounds = array<i64: 256, 128>}, {pipeline_mode = #tpu.pipeline_mode<synchronous>, transform_indices = @transform_8, window_bounds = array<i64: 1, 128>}, {transform_indices = @transform_9, window_bounds = array<i64: 8, 128>}]} {
    %c0 = arith.constant 0 : index
    %c0_0 = arith.constant 0 : index
    %0 = vector.load %arg1[%c0, %c0_0] : memref<8x16xf32, #tpu.memory_space<vmem>>, vector<8x16xf32>
    %1 = arith.truncf %0 : vector<8x16xf32> to vector<8x16xbf16>
    %c0_1 = arith.constant 0 : index
    %c0_2 = arith.constant 0 : index
    %2 = vector.load %arg2[%c0_1, %c0_2] : memref<16x128xbf16, #tpu.memory_space<vmem>>, vector<16x128xbf16>
    %cst = arith.constant dense<0.000000e+00> : vector<8x128xf32>
    %3 = tpu.matmul %1, %2, %cst {dimension_numbers = #tpu.dot_dimension_numbers<[1], [0], [0], [1], [0, 0, 1, 1], [], []>} : vector<8x16xbf16>, vector<16x128xbf16>, vector<8x128xf32> -> vector<8x128xf32>
    %c0_3 = arith.constant 0 : index
    %c0_4 = arith.constant 0 : index
    %4 = vector.load %arg3[%c0_3, %c0_4] : memref<1x128xf32, #tpu.memory_space<vmem>>, vector<1x128xf32>
    %5 = vector.broadcast %4 : vector<1x128xf32> to vector<8x128xf32>
    %6 = arith.addf %3, %5 : vector<8x128xf32>
    %cst_5 = arith.constant 0.000000e+00 : f32
    %7 = vector.broadcast %cst_5 : f32 to vector<8x128xf32>
    %8 = arith.maximumf %6, %7 : vector<8x128xf32>
    %9 = arith.truncf %8 : vector<8x128xf32> to vector<8x128xbf16>
    %c0_6 = arith.constant 0 : index
    %c0_7 = arith.constant 0 : index
    %10 = vector.load %arg4[%c0_6, %c0_7] : memref<128x128xbf16, #tpu.memory_space<vmem>>, vector<128x128xbf16>
    %cst_8 = arith.constant dense<0.000000e+00> : vector<8x128xf32>
    %11 = tpu.matmul %9, %10, %cst_8 {dimension_numbers = #tpu.dot_dimension_numbers<[1], [0], [0], [1], [0, 0, 1, 1], [], []>} : vector<8x128xbf16>, vector<128x128xbf16>, vector<8x128xf32> -> vector<8x128xf32>
    %c0_9 = arith.constant 0 : index
    %c0_10 = arith.constant 0 : index
    %12 = vector.load %arg5[%c0_9, %c0_10] : memref<1x128xf32, #tpu.memory_space<vmem>>, vector<1x128xf32>
    %13 = vector.broadcast %12 : vector<1x128xf32> to vector<8x128xf32>
    %14 = arith.addf %11, %13 : vector<8x128xf32>
    %cst_11 = arith.constant 0.000000e+00 : f32
    %15 = vector.broadcast %cst_11 : f32 to vector<8x128xf32>
    %16 = arith.maximumf %14, %15 : vector<8x128xf32>
    %17 = arith.truncf %16 : vector<8x128xf32> to vector<8x128xbf16>
    %c0_12 = arith.constant 0 : index
    %c0_13 = arith.constant 0 : index
    %18 = vector.load %arg6[%c0_12, %c0_13] : memref<128x256xbf16, #tpu.memory_space<vmem>>, vector<128x256xbf16>
    %cst_14 = arith.constant dense<0.000000e+00> : vector<8x256xf32>
    %19 = tpu.matmul %17, %18, %cst_14 {dimension_numbers = #tpu.dot_dimension_numbers<[1], [0], [0], [1], [0, 0, 1, 1], [], []>} : vector<8x128xbf16>, vector<128x256xbf16>, vector<8x256xf32> -> vector<8x256xf32>
    %c0_15 = arith.constant 0 : index
    %c0_16 = arith.constant 0 : index
    %20 = vector.load %arg7[%c0_15, %c0_16] : memref<1x256xf32, #tpu.memory_space<vmem>>, vector<1x256xf32>
    %21 = vector.broadcast %20 : vector<1x256xf32> to vector<8x256xf32>
    %22 = arith.addf %19, %21 : vector<8x256xf32>
    %cst_17 = arith.constant 0.000000e+00 : f32
    %23 = vector.broadcast %cst_17 : f32 to vector<8x256xf32>
    %24 = arith.maximumf %22, %23 : vector<8x256xf32>
    %25 = arith.truncf %24 : vector<8x256xf32> to vector<8x256xbf16>
    %c0_18 = arith.constant 0 : index
    %c0_19 = arith.constant 0 : index
    %26 = vector.load %arg8[%c0_18, %c0_19] : memref<256x128xbf16, #tpu.memory_space<vmem>>, vector<256x128xbf16>
    %cst_20 = arith.constant dense<0.000000e+00> : vector<8x128xf32>
    %27 = tpu.matmul %25, %26, %cst_20 {dimension_numbers = #tpu.dot_dimension_numbers<[1], [0], [0], [1], [0, 0, 1, 1], [], []>} : vector<8x256xbf16>, vector<256x128xbf16>, vector<8x128xf32> -> vector<8x128xf32>
    %c0_21 = arith.constant 0 : index
    %c0_22 = arith.constant 0 : index
    %28 = vector.load %arg9[%c0_21, %c0_22] : memref<1x128xf32, #tpu.memory_space<vmem>>, vector<1x128xf32>
    %29 = vector.broadcast %28 : vector<1x128xf32> to vector<8x128xf32>
    %30 = arith.addf %27, %29 : vector<8x128xf32>
    %31 = vector.extract_strided_slice %30 {offsets = [0, 0], sizes = [8, 1], strides = [1, 1]} : vector<8x128xf32> to vector<8x1xf32>
    %32 = vector.broadcast %31 : vector<8x1xf32> to vector<8x128xf32>
    %33 = arith.addf %32, %30 : vector<8x128xf32>
    %34 = tpu.iota {dimensions = array<i32: 0>} : vector<8x128xi32>
    %35 = tpu.iota {dimensions = array<i32: 1>} : vector<8x128xi32>
    %c8_i32 = arith.constant 8 : i32
    %36 = arith.muli %arg0, %c8_i32 : i32
    %37 = vector.broadcast %36 : i32 to vector<8x128xi32>
    %38 = arith.addi %34, %37 : vector<8x128xi32>
    %c4_i32 = arith.constant 4 : i32
    %39 = vector.broadcast %c4_i32 : i32 to vector<8x128xi32>
    %40 = arith.cmpi slt, %38, %39 : vector<8x128xi32>
    %c1_i32 = arith.constant 1 : i32
    %41 = vector.broadcast %c1_i32 : i32 to vector<8x128xi32>
    %42 = arith.cmpi sge, %35, %41 : vector<8x128xi32>
    %43 = arith.andi %40, %42 : vector<8x128xi1>
    %cst_23 = arith.constant 0.000000e+00 : f32
    %44 = vector.broadcast %cst_23 : f32 to vector<8x128xf32>
    %45 = arith.select %43, %30, %44 : vector<8x128xi1>, vector<8x128xf32>
    %46 = vector.shape_cast %45 : vector<8x128xf32> to vector<1x8x128xf32>
    %cst_24 = arith.constant dense<0.000000e+00> : vector<1xf32>
    %47 = vector.multi_reduction <add>, %46, %cst_24 [1, 2] : vector<1x8x128xf32> to vector<1xf32>
    %48 = vector.shape_cast %47 : vector<1xf32> to vector<1x1x1xf32>
    %49 = vector.extract %48[0, 0, 0] : f32 from vector<1x1x1xf32>
    %c0_i32 = arith.constant 0 : i32
    %50 = vector.broadcast %c0_i32 : i32 to vector<8x128xi32>
    %51 = arith.cmpi eq, %34, %50 : vector<8x128xi32>
    %c127_i32 = arith.constant 127 : i32
    %52 = vector.broadcast %c127_i32 : i32 to vector<8x128xi32>
    %53 = arith.cmpi eq, %35, %52 : vector<8x128xi32>
    %54 = arith.andi %51, %53 : vector<8x128xi1>
    %55 = vector.broadcast %49 : f32 to vector<8x128xf32>
    %56 = arith.select %54, %55, %33 : vector<8x128xi1>, vector<8x128xf32>
    %c0_25 = arith.constant 0 : index
    %c0_26 = arith.constant 0 : index
    %57 = vector.load %arg10[%c0_25, %c0_26] : memref<8x128xf32, #tpu.memory_space<vmem>>, vector<8x128xf32>
    tpu.vector_store %arg10[%c0_25, %c0_26], %56 {strides = array<i32>} : memref<8x128xf32, #tpu.memory_space<vmem>>, vector<8x128xf32>,
    return
  }
  func.func @transform_0(%arg0: i32) -> (i32, i32) {
    %c0_i32 = arith.constant 0 : i32
    %c0_i32_0 = arith.constant 0 : i32
    return %arg0, %c0_i32 : i32, i32
  }
  func.func @transform_1(%arg0: i32) -> (i32, i32) {
    %c0_i32 = arith.constant 0 : i32
    %c0_i32_0 = arith.constant 0 : i32
    %c0_i32_1 = arith.constant 0 : i32
    return %c0_i32, %c0_i32_0 : i32, i32
  }
  func.func @transform_2(%arg0: i32) -> (i32, i32) {
    %c0_i32 = arith.constant 0 : i32
    %c0_i32_0 = arith.constant 0 : i32
    %c0_i32_1 = arith.constant 0 : i32
    return %c0_i32, %c0_i32_0 : i32, i32
  }
  func.func @transform_3(%arg0: i32) -> (i32, i32) {
    %c0_i32 = arith.constant 0 : i32
    %c0_i32_0 = arith.constant 0 : i32
    %c0_i32_1 = arith.constant 0 : i32
    return %c0_i32, %c0_i32_0 : i32, i32
  }
  func.func @transform_4(%arg0: i32) -> (i32, i32) {
    %c0_i32 = arith.constant 0 : i32
    %c0_i32_0 = arith.constant 0 : i32
    %c0_i32_1 = arith.constant 0 : i32
    return %c0_i32, %c0_i32_0 : i32, i32
  }
  func.func @transform_5(%arg0: i32) -> (i32, i32) {
    %c0_i32 = arith.constant 0 : i32
    %c0_i32_0 = arith.constant 0 : i32
    %c0_i32_1 = arith.constant 0 : i32
    return %c0_i32, %c0_i32_0 : i32, i32
  }
  func.func @transform_6(%arg0: i32) -> (i32, i32) {
    %c0_i32 = arith.constant 0 : i32
    %c0_i32_0 = arith.constant 0 : i32
    %c0_i32_1 = arith.constant 0 : i32
    return %c0_i32, %c0_i32_0 : i32, i32
  }
  func.func @transform_7(%arg0: i32) -> (i32, i32) {
    %c0_i32 = arith.constant 0 : i32
    %c0_i32_0 = arith.constant 0 : i32
    %c0_i32_1 = arith.constant 0 : i32
    return %c0_i32, %c0_i32_0 : i32, i32
  }
  func.func @transform_8(%arg0: i32) -> (i32, i32) {
    %c0_i32 = arith.constant 0 : i32
    %c0_i32_0 = arith.constant 0 : i32
    %c0_i32_1 = arith.constant 0 : i32
    return %c0_i32, %c0_i32_0 : i32, i32
  }
  func.func @transform_9(%arg0: i32) -> (i32, i32) {
    %c0_i32 = arith.constant 0 : i32
    %c0_i32_0 = arith.constant 0 : i32
    return %arg0, %c0_i32 : i32, i32
  }
}

</mosaic_0001>

<bundles_post_ra>
// kernel: tpu_custom_call.1
= control target key start
LH: loop header
LB: loop body
LE: loop exit
PB: predicated region body
PF: predicated region fallthrough
CT: control target
= control target key end

     0   :  { %14 = vsyncpa [#allocation3], 0  ;;  %s1125_s0 = inlined_call_operand.hbm [shape: f32[8,16], index: 0, kind: input, shape index: {}]   ;;  %s1126_s1 = inlined_call_operand.hbm [shape: bf16[16,128], index: 1, kind: input, shape index: {}]   ;;  %s1127_s2 = inlined_call_operand.vmem [shape: f32[1,128], index: 2, kind: input, shape index: {}]   ;;  %s1128_s3 = inlined_call_operand.hbm [shape: bf16[128,128], index: 3, kind: input, shape index: {}]   ;;  %s1129_s4 = inlined_call_operand.vmem [shape: f32[1,128], index: 4, kind: input, shape index: {}]   ;;  %s1130_s5 = inlined_call_operand.hbm [shape: bf16[128,256], index: 5, kind: input, shape index: {}]   ;;  %s1131_s6 = inlined_call_operand.vmem [shape: f32[1,256], index: 6, kind: input, shape index: {}]   ;;  %s1132_s7 = inlined_call_operand.hbm [shape: bf16[256,128], index: 7, kind: input, shape index: {}]   ;;  %s1133_s8 = inlined_call_operand.vmem [shape: f32[1,128], index: 8, kind: input, shape index: {}]   ;;  %s1134_s9 = inlined_call_operand.hbm [shape: f32[8,128], index: 9, kind: output, shape index: {}]  }
   0x1   :  { %15 = vsyncpa [#allocation6], 0 }
   0x2   :  { %16 = vsyncpa [#allocation9], 0 }
   0x3   :  { %17 = vsyncpa [#allocation4], 0  ;;  %s962_s30 = smov [#allocation5]   ;;  %s822_s13 = scalar_lea.hbm %s1126_s1, 128 }
   0x4   :  { %s33_s10 = sshll.u32 %s962_s30, 4  ;;  %p823_p0 = scmp.ne.s32.totalorder %s1126_s1, %s822_s13  ;;  %s34_s10 = int_to_ptr.vmem [resolvable:$true] %s33_s10 }
   0x5   :  { %p826_p1 = scmp.lt.u32.totalorder %s822_s13, %s1126_s1 }
   0x7   :  { %p828_p2 = pnand %p826_p1, %p823_p0 }
   0x9   :  { %831 = shalt.err (!%p828_p2)
}
   0xa   :  { %s832_s18 = scalar_lea.vmem %s34_s10, 128  ;;  %p837_p4 = scmp.lt.s32.totalorder %s34_s10, %s34_s10 }
   0xb   :  { %p833_p3 = scmp.ne.s32.totalorder %s34_s10, %s832_s18  ;;  %p838_p5 = scmp.lt.s32.totalorder %s832_s18, %s832_s18 }
   0xd   :  { %p839_p6 = por %p838_p5, %p837_p4 }
   0xf   :  { %p840_p7 = pnand %p839_p6, %p833_p3 }
  0x11   :  { %843 = shalt.err (!%p840_p7)
}
  0x12   :  { %s963_s19 = smov 64   ;;  %s964_s20 = smov 4  }
  0x13   :  { %39 = dma.hbm_to_vmem [thread:$0]  %s1126_s1, 128, %s34_s10, [#allocation6], %s963_s19, %s963_s19, %s964_s20  }
  0x14   :  { %s965_s23 = smov [#allocation8]   ;;  %s844_s27 = scalar_lea.hbm %s1130_s5, 2048 }
  0x15   :  { %s61_s24 = sshll.u32 %s965_s23, 4  ;;  %p845_p8 = scmp.ne.s32.totalorder %s1130_s5, %s844_s27  ;;  %s62_s24 = int_to_ptr.vmem [resolvable:$true] %s61_s24 }
  0x16   :  { %p848_p9 = scmp.lt.u32.totalorder %s844_s27, %s1130_s5 }
  0x18   :  { %p850_p10 = pnand %p848_p9, %p845_p8 }
  0x1a   :  { %853 = shalt.err (!%p850_p10)
}
  0x1b   :  { %s854_s12 = scalar_lea.vmem %s62_s24, 2048  ;;  %p859_p12 = scmp.lt.s32.totalorder %s62_s24, %s62_s24 }
  0x1c   :  { %p855_p11 = scmp.ne.s32.totalorder %s62_s24, %s854_s12  ;;  %p860_p13 = scmp.lt.s32.totalorder %s854_s12, %s854_s12 }
  0x1e   :  { %p861_p0 = por %p860_p13, %p859_p12 }
  0x20   :  { %p862_p1 = pnand %p861_p0, %p855_p11 }
  0x22   :  { %865 = shalt.err (!%p862_p1)
}
  0x23   :  { %s966_s1 = smov 128   ;;  %s967_s10 = smov 8  }
  0x24   :  { %67 = dma.hbm_to_vmem [thread:$0]  %s1130_s5, 2048, %s62_s24, [#allocation9], %s966_s1, %s966_s1, %s967_s10  }
  0x25   :  { %s968_s15 = smov [#allocation2]   ;;  %s969_s17 = smov [#allocation7]  }
  0x26   :  { %s24_s16 = sshll.u32 %s968_s15, 4  ;;  %s47_s18 = sshll.u32 %s969_s17, 4  ;;  %s25_s16 = int_to_ptr.vmem [resolvable:$true] %s24_s16  ;;  %s1052_s18 = int_to_ptr.vmem [resolvable:$true] %s47_s18 }
  0x27   :  { %s866_s23 = scalar_lea.hbm %s1125_s0, 128 }
  0x28   :  { %p867_p2 = scmp.ne.s32.totalorder %s1125_s0, %s866_s23  ;;  %p870_p3 = scmp.lt.u32.totalorder %s866_s23, %s1125_s0 }
  0x2a   :  { %p872_p4 = pnand %p870_p3, %p867_p2 }
  0x2c   :  { %875 = shalt.err (!%p872_p4)
}
  0x2d   :  { %s876_s5 = scalar_lea.vmem %s25_s16, 128  ;;  %p881_p6 = scmp.lt.s32.totalorder %s25_s16, %s25_s16 }
  0x2e   :  { %p877_p5 = scmp.ne.s32.totalorder %s25_s16, %s876_s5  ;;  %p882_p7 = scmp.lt.s32.totalorder %s876_s5, %s876_s5 }
  0x30   :  { %p883_p8 = por %p882_p7, %p881_p6 }
  0x32   :  { %p884_p9 = pnand %p883_p8, %p877_p5 }
  0x34   :  { %887 = shalt.err (!%p884_p9)
}
  0x35   :  { %27 = dma.hbm_to_vmem [thread:$0]  %s1125_s0, 128, %s25_s16, [#allocation3]  }
  0x36   :  { %s888_s12 = scalar_lea.hbm %s1128_s3, 1024 }
  0x37   :  { %p889_p10 = scmp.ne.s32.totalorder %s1128_s3, %s888_s12  ;;  %p892_p11 = scmp.lt.u32.totalorder %s888_s12, %s1128_s3 }
  0x39   :  { %p894_p12 = pnand %p892_p11, %p889_p10 }
  0x3b   :  { %897 = shalt.err (!%p894_p12)
}
  0x3c   :  { %s898_s15 = scalar_lea.vmem %s1052_s18, 1024  ;;  %p903_p0 = scmp.lt.s32.totalorder %s1052_s18, %s1052_s18 }
  0x3d   :  { %p899_p13 = scmp.ne.s32.totalorder %s1052_s18, %s898_s15  ;;  %p904_p1 = scmp.lt.s32.totalorder %s898_s15, %s898_s15 }
  0x3f   :  { %p905_p2 = por %p904_p1, %p903_p0 }
  0x41   :  { %p906_p3 = pnand %p905_p2, %p899_p13 }
  0x43   :  { %909 = shalt.err (!%p906_p3)
}
  0x44   :  { %53 = dma.hbm_to_vmem [thread:$0]  %s1128_s3, 1024, %s1052_s18, [#allocation6], %s963_s19, %s963_s19, %s964_s20  }
  0x45   :  { %s970_s17 = smov [#allocation10]   ;;  %s910_s25 = scalar_lea.hbm %s1132_s7, 2048 }
  0x46   :  { %s75_s21 = sshll.u32 %s970_s17, 4  ;;  %p911_p4 = scmp.ne.s32.totalorder %s1132_s7, %s910_s25  ;;  %s76_s21 = int_to_ptr.vmem [resolvable:$true] %s75_s21 }
  0x47   :  { %p914_p5 = scmp.lt.u32.totalorder %s910_s25, %s1132_s7 }
  0x49   :  { %p916_p6 = pnand %p914_p5, %p911_p4 }
  0x4b   :  { %919 = shalt.err (!%p916_p6)
}
  0x4c   :  { %s920_s24 = scalar_lea.vmem %s76_s21, 2048  ;;  %p925_p8 = scmp.lt.s32.totalorder %s76_s21, %s76_s21 }
  0x4d   :  { %p921_p7 = scmp.ne.s32.totalorder %s76_s21, %s920_s24  ;;  %p926_p9 = scmp.lt.s32.totalorder %s920_s24, %s920_s24 }
  0x4f   :  { %p927_p10 = por %p926_p9, %p925_p8 }
  0x51   :  { %p928_p11 = pnand %p927_p10, %p921_p7 }
  0x53   :  { %931 = shalt.err (!%p928_p11)
}
  0x54   :  { %81 = dma.hbm_to_vmem [thread:$0]  %s1132_s7, 2048, %s76_s21, [#allocation9], %s963_s19, %s963_s19, %s964_s20  }
  0x55   :  { %954 = dma.done.wait [#allocation3], 128  }
  0x56   :  { %955 = vsyncadd [#allocation3], 4294967168 }
  0x57   :  { %956 = dma.done.wait [#allocation6], 1152  }
  0x58   :  { %957 = vsyncadd [#allocation6], 4294966144 }
  0x59   :  { %958 = dma.done.wait [#allocation9], 4096  }
  0x5a   :  { %959 = vsyncadd [#allocation9], 4294963200  ;;  %v971_v0 = vmov 0.0   ;;  %vm972_vm0 = vmmov 0   ;;  %v773_v1 = vld [vmem:[#allocation5] sm:$0xff]   ;;  %v100_v2 = vld [vmem:[#allocation2] sm:$0xff]  ;;  %v294_v61 = vlaneseq }
  0x5b   :  { %731 = vmatprep.subr.bf16.mxu0 %v971_v0  ;;  %733 = vmatprep.mubr.msk.bf16.mxu0 %vm972_vm0, %v971_v0  ;;  %v101_v3 = vpack.c.bf16 %v100_v2, %v100_v2  ;;  %vm117_vm1 = vcmask 130048   ;;  %v774_v4 = vld [vmem:[#allocation7] sm:$0xff]   ;;  %v775_v5 = vld [vmem:[#allocation7 + $0x8] sm:$0xff]   ;;  %v776_v6 = vld [vmem:[#allocation7 + $0x10] sm:$0xff]   ;;  %v973_v36 = vmov 0  }
  0x5c   :  { %737 = vmatprep.subr.bf16.mxu1 %v971_v0  ;;  %753 = vmatprep.mubr.msk.bf16.mxu1 %vm972_vm0, %v971_v0  ;;  %v777_v7 = vld [vmem:[#allocation7 + $0x18] sm:$0xff]   ;;  %v778_v8 = vld [vmem:[#allocation7 + $0x20] sm:$0xff]   ;;  %v779_v9 = vld [vmem:[#allocation7 + $0x28] sm:$0xff]   ;;  %v295_v62 = vshrl.u32 %v294_v61, 7 }
  0x5d   :  { %732 = vmatpush3.bf16.msra.mxu0 %v773_v1  ;;  %738 = vmatpush3.bf16.msra.mxu1 %v774_v4  ;;  %v780_v10 = vld [vmem:[#allocation7 + $0x30] sm:$0xff]   ;;  %v781_v11 = vld [vmem:[#allocation7 + $0x38] sm:$0xff]   ;;  %v782_v12 = vld [vmem:[#allocation8] ss:$8 sps:$4 sm:$0xff]  }
  0x5e   :  { %739 = vmatprep.subr.bf16.mxu1 %v971_v0  ;;  %v784_v13 = vld [vmem:[#allocation8 + $0x4] ss:$8 sps:$4 sm:$0xff]   ;;  %v787_v14 = vld [vmem:[#allocation8 + $0x14] ss:$8 sps:$4 sm:$0xff]   ;;  %v785_v15 = vld [vmem:[#allocation8 + $0x10] ss:$8 sps:$4 sm:$0xff]   ;;  %772 = vset.pattern.permute.xlu0 %v973_v36 }
  0x5f   :  { %384 = vmatprep.subr.bf16.mxu0 %v784_v13  ;;  %v790_v16 = vld [vmem:[#allocation8 + $0x24] ss:$8 sps:$4 sm:$0xff]   ;;  %v788_v17 = vld [vmem:[#allocation8 + $0x20] ss:$8 sps:$4 sm:$0xff]   ;;  %v793_v18 = vld [vmem:[#allocation8 + $0x34] ss:$8 sps:$4 sm:$0xff]  }
  0x60   :  { %734 = vmatmul.mubr.msk.bf16.vlgmr.msra.gmra.mrb[0].mxu0 %vm117_vm1, %v101_v3  ;;  %v791_v19 = vld [vmem:[#allocation8 + $0x30] ss:$8 sps:$4 sm:$0xff]   ;;  %v796_v20 = vld [vmem:[#allocation8 + $0x44] ss:$8 sps:$4 sm:$0xff]   ;;  %v794_v21 = vld [vmem:[#allocation8 + $0x40] ss:$8 sps:$4 sm:$0xff]  }
  0x61   :  { %740 = vmatpush3.bf16.msra.mxu1 %v775_v5  ;;  %385 = vmatpush1.bf16.msra.mxu0 %v782_v12  ;;  %v799_v22 = vld [vmem:[#allocation8 + $0x54] ss:$8 sps:$4 sm:$0xff]   ;;  %v797_v23 = vld [vmem:[#allocation8 + $0x50] ss:$8 sps:$4 sm:$0xff]   ;;  %v802_v24 = vld [vmem:[#allocation8 + $0x64] ss:$8 sps:$4 sm:$0xff]  }
  0x62   :  { %741 = vmatprep.subr.bf16.mxu1 %v971_v0  ;;  %386 = vmatprep.subr.bf16.mxu0 %v787_v14  ;;  %v800_v25 = vld [vmem:[#allocation8 + $0x60] ss:$8 sps:$4 sm:$0xff]   ;;  %v653_v26 = vld [vmem:[%s1127_s2] ss:$0 sm:$0xff]  ;;  %v805_v34 = vld [vmem:[#allocation8 + $0x74] ss:$8 sps:$4 sm:$0xff]  }
  0x63   :  { %v803_v35 = vld [vmem:[#allocation8 + $0x70] ss:$8 sps:$4 sm:$0xff]   ;;  %416 = vmatprep.mubr.bf16.mxu0 %v973_v36  ;;  %v806_v37 = vld [vmem:[#allocation10 + $0x40] sm:$0xff]   ;;  %v808_v39 = vld [vmem:[#allocation10 + $0x48] sm:$0xff]   ;;  %v296_v63 = vsub.s32 0, %v295_v62  ;;  %v300_v1 = vsub.s32 1, %v295_v62 }
  0x64   :  { %v807_v38 = vld [vmem:[#allocation10] sm:$0xff]   ;;  %v809_v40 = vld [vmem:[#allocation10 + $0x8] sm:$0xff]   ;;  %v810_v41 = vld [vmem:[#allocation10 + $0x50] sm:$0xff]   ;;  %v613_v14 = vand.u32 127, %v294_v61  ;;  %vm617_vm2 = vcmp.lt.s32.totalorder %v295_v62, 4  ;;  %vm630_vm5 = vcmp.eq.s32.totalorder %v295_v62, 0 }
  0x65   :  { %742 = vmatpush3.bf16.msra.mxu1 %v776_v6  ;;  %387 = vmatpush1.bf16.msra.mxu0 %v785_v15  ;;  %v811_v42 = vld [vmem:[#allocation10 + $0x10] sm:$0xff]   ;;  %v812_v43 = vld [vmem:[#allocation10 + $0x58] sm:$0xff]   ;;  %v814_v45 = vld [vmem:[#allocation10 + $0x60] sm:$0xff]  }
  0x66   :  { %743 = vmatprep.subr.bf16.mxu1 %v971_v0  ;;  %388 = vmatprep.subr.bf16.mxu0 %v790_v16  ;;  %v813_v44 = vld [vmem:[#allocation10 + $0x18] sm:$0xff]   ;;  %v815_v46 = vld [vmem:[#allocation10 + $0x20] sm:$0xff]   ;;  %v816_v47 = vld [vmem:[#allocation10 + $0x68] sm:$0xff]   ;;  %vm618_vm3 = vcmp.ge.s32.totalorder %v613_v14, 1  ;;  %vm631_vm6 = vcmp.eq.s32.totalorder %v613_v14, 127 }
  0x67   :  { %v817_v48 = vld [vmem:[#allocation10 + $0x28] sm:$0xff]   ;;  %v656_v49 = vld [vmem:[%s1129_s4] ss:$0 sm:$0xff]  ;;  %v820_v59 = vld [vmem:[#allocation10 + $0x78] sm:$0xff]  }
  0x68   :  { %v818_v57 = vld [vmem:[#allocation10 + $0x70] sm:$0xff]   ;;  %v821_v60 = vld [vmem:[#allocation10 + $0x38] sm:$0xff]   ;;  %vm619_vm4 = vmand %vm617_vm2, %vm618_vm3 }
  0x69   :  { %744 = vmatpush3.bf16.msra.mxu1 %v777_v7  ;;  %389 = vmatpush1.bf16.msra.mxu0 %v788_v17  ;;  %v819_v58 = vld [vmem:[#allocation10 + $0x30] sm:$0xff]   ;;  %vm632_vm7 = vmand %vm630_vm5, %vm631_vm6 }
  0x6a   :  { %745 = vmatprep.subr.bf16.mxu1 %v971_v0  ;;  %390 = vmatprep.subr.bf16.mxu0 %v793_v18  ;;  %v681_v16 = vld [vmem:[%s1133_s8] ss:$0 sm:$0xff]  ;;  %s974_s8 = smov [#allocation11]  }
  0x6b   :  { %s642_s11 = sshll.u32 %s974_s8, 4  ;;  %s643_s11 = int_to_ptr.vmem [resolvable:$true] %s642_s11 }
  0x6c   :  { %s932_s1 = scalar_lea.vmem %s643_s11, 128  ;;  %p937_p13 = scmp.lt.s32.totalorder %s643_s11, %s643_s11 }
  0x6d   :  { %746 = vmatpush3.bf16.msra.mxu1 %v778_v8  ;;  %391 = vmatpush1.bf16.msra.mxu0 %v791_v19  ;;  %p933_p12 = scmp.ne.s32.totalorder %s643_s11, %s932_s1  ;;  %p938_p0 = scmp.lt.s32.totalorder %s932_s1, %s932_s1 }
  0x6e   :  { %747 = vmatprep.subr.bf16.mxu1 %v971_v0  ;;  %392 = vmatprep.subr.bf16.mxu0 %v796_v20 }
  0x6f   :  { %p939_p1 = por %p938_p0, %p937_p13 }
  0x71   :  { %748 = vmatpush3.bf16.msra.mxu1 %v779_v9  ;;  %393 = vmatpush1.bf16.msra.mxu0 %v794_v21  ;;  %p940_p2 = pnand %p939_p1, %p933_p12 }
  0x72   :  { %749 = vmatprep.subr.bf16.mxu1 %v971_v0  ;;  %394 = vmatprep.subr.bf16.mxu0 %v799_v22 }
  0x75   :  { %750 = vmatpush3.bf16.msra.mxu1 %v780_v10  ;;  %395 = vmatpush1.bf16.msra.mxu0 %v797_v23 }
  0x76   :  { %751 = vmatprep.subr.bf16.mxu1 %v971_v0  ;;  %396 = vmatprep.subr.bf16.mxu0 %v802_v24  ;;  %v292_v0 = vld [vmem:[%s1131_s6] sm:$0x3] }
  0x77   :  { %v297_v2 = vrot.slane %v292_v0, %v296_v63  ;;  %v301_v3 = vrot.slane %v292_v0, %v300_v1 }
  0x79   :  { %752 = vmatpush3.bf16.msra.mxu1 %v781_v11  ;;  %397 = vmatpush1.bf16.msra.mxu0 %v800_v25 }
  0x7a   :  { %398 = vmatprep.subr.bf16.mxu0 %v805_v34  ;;  %709 = vmatprep.subr.bf16.mxu1 %v806_v37 }
  0x7d   :  { %399 = vmatpush1.bf16.msra.mxu0 %v803_v35 }
 0x133   :  { %v155_v27 = vpop.f32.mrb[0].mxu0 }
 0x134   :  { %v156_v28 = vadd.f32 %v653_v26, %v155_v27  ;;  %v735_v29 = vpop.f32.mrb[1].mxu0 }
 0x135   :  { %v158_v30 = vpop.f32.mrb[2].mxu0 }
 0x136   :  { %v161_v31 = vmax.f32 %v156_v28, 0.0  ;;  %v736_v32 = vpop.f32.mrb[3].mxu0 }
 0x138   :  { %v162_v33 = vpack.c.bf16 %v161_v31, %v161_v31 }
 0x13a   :  { %754 = vmatmul.mubr.bf16.vlgmr.msra.gmra.mrb[0].mxu1 %v162_v33 }
 0x13b   :  { %710 = vmatpush3.bf16.msra.mxu1 %v807_v38 }
 0x13c   :  { %711 = vmatprep.subr.bf16.mxu1 %v808_v39 }
 0x13f   :  { %712 = vmatpush3.bf16.msra.mxu1 %v809_v40 }
 0x140   :  { %713 = vmatprep.subr.bf16.mxu1 %v810_v41 }
 0x143   :  { %714 = vmatpush3.bf16.msra.mxu1 %v811_v42 }
 0x144   :  { %715 = vmatprep.subr.bf16.mxu1 %v812_v43 }
 0x147   :  { %716 = vmatpush3.bf16.msra.mxu1 %v813_v44 }
 0x148   :  { %717 = vmatprep.subr.bf16.mxu1 %v814_v45 }
 0x14b   :  { %718 = vmatpush3.bf16.msra.mxu1 %v815_v46 }
 0x14c   :  { %719 = vmatprep.subr.bf16.mxu1 %v816_v47 }
 0x14f   :  { %720 = vmatpush3.bf16.msra.mxu1 %v817_v48 }
 0x150   :  { %721 = vmatprep.subr.bf16.mxu1 %v818_v57 }
 0x153   :  { %722 = vmatpush3.bf16.msra.mxu1 %v819_v58 }
 0x154   :  { %723 = vmatprep.subr.bf16.mxu1 %v820_v59 }
 0x157   :  { %724 = vmatpush3.bf16.msra.mxu1 %v821_v60 }
 0x20d   :  { %v268_v50 = vpop.f32.mrb[0].mxu1 }
 0x20e   :  { %v269_v51 = vadd.f32 %v656_v49, %v268_v50  ;;  %v755_v52 = vpop.f32.mrb[1].mxu1 }
 0x20f   :  { %v271_v53 = vpop.f32.mrb[2].mxu1 }
 0x210   :  { %v274_v54 = vmax.f32 %v269_v51, 0.0  ;;  %v756_v55 = vpop.f32.mrb[3].mxu1 }
 0x212   :  { %v275_v56 = vpack.c.bf16 %v274_v54, %v274_v54 }
 0x214   :  { %417 = vmatmul.mubr.bf16.vlgmr.msra.gmra.mrb[4].mxu0 %v275_v56 }
 0x2e7   :  { %v418_v4 = vpop.f32.mrb[4].mxu0 }
 0x2e8   :  { %v419_v5 = vadd.f32 %v418_v4, %v297_v2  ;;  %v420_v6 = vpop.f32.mrb[5].mxu0 }
 0x2e9   :  { %v421_v7 = vadd.f32 %v420_v6, %v301_v3  ;;  %v422_v8 = vpop.f32.mrb[6].mxu0 }
 0x2ea   :  { %v425_v9 = vmax.f32 %v419_v5, 0.0  ;;  %v423_v10 = vpop.f32.mrb[7].mxu0 }
 0x2eb   :  { %v426_v11 = vmax.f32 %v421_v7, 0.0 }
 0x2ec   :  { %v427_v13 = vpack.c.bf16 %v425_v9, %v425_v9 }
 0x2ed   :  { %v428_v12 = vpack.c.bf16 %v426_v11, %v426_v11 }
 0x2ef   :  { %596 = vmatprep.mubr.bf16.mxu1 %v428_v12 }
 0x2f0   :  { %597 = vmatmul.mubr.bf16.vlgmr.msra.gmra.mrb[4].mxu1 %v427_v13 }
 0x3c3   :  { %v725_v15 = vpop.f32.mrb[4].mxu1 }
 0x3c4   :  { %v726_v17 = vpop.f32.mrb[5].mxu1 }
 0x3c5   :  { %v727_v18 = vadd.f32 %v726_v17, %v725_v15  ;;  %v728_v19 = vpop.f32.mrb[6].mxu1 }
 0x3c6   :  { %v729_v20 = vpop.f32.mrb[7].mxu1 }
 0x3c7   :  { %v599_v21 = vadd.f32 %v727_v18, %v681_v16 }
 0x3c9   :  { %v620_v22 = vsel %vm619_vm4, %v599_v21, 0.0 }
 0x3ca   :  { %621 = vadd.xlane.f32.xlu0 %v620_v22 }
 0x3e0   :  { %606 = vperm.xlu0 %772, %v599_v21  }
 0x457   :  { %v622_v23 = vpop.xlane.xlu0 %621 }
 0x458   :  { %v623_v24 = vrot.slane %v622_v23, 4 }
 0x45a   :  { %v624_v25 = vadd.f32 %v623_v24, %v622_v23 }
 0x45c   :  { %v625_v26 = vrot.slane %v624_v25, 2 }
 0x45e   :  { %v626_v27 = vadd.f32 %v625_v26, %v624_v25 }
 0x45f   :  { %v607_v30 = vpop.permute.xlu0 %606 }
 0x460   :  { %v627_v28 = vrot.slane %v626_v27, 1  ;;  %v609_v31 = vadd.f32 %v607_v30, %v599_v21 }
 0x462   :  { %v628_v29 = vadd.f32 %v627_v28, %v626_v27 }
 0x464   :  { %757 = vpush %v628_v29 }
 0x495   :  { %s758_s12 = spop %757 }
 0x496   :  { %v633_v32 = vstv %s758_s12 }
 0x497   :  { %v634_v33 = vsel %vm632_vm7, %v633_v32, %v609_v31 }
 0x498   :  { %635 = vst [vmem:[#allocation11] sm:$0xff] %v634_v33 }
 0x499   :  { %943 = shalt.err (!%p940_p2)
}
 0x49a   :  { %s944_s14 = scalar_lea.hbm %s1134_s9, 128 }
 0x49b   :  { %p945_p3 = scmp.ne.s32.totalorder %s1134_s9, %s944_s14  ;;  %p948_p4 = scmp.lt.u32.totalorder %s944_s14, %s1134_s9 }
 0x49d   :  { %p950_p5 = pnand %p948_p4, %p945_p3 }
 0x49f   :  { %953 = shalt.err (!%p950_p5)
}
 0x4a0   :  { %645 = dma.vmem_to_hbm [thread:$0]  %s643_s11, 128, %s1134_s9, [#allocation4]  }
 0x4a1   :  { %960 = dma.done.wait [#allocation4], 128  }
 0x4a2   :  { %961 = vsyncadd [#allocation4], 4294967168 }
 0x4a3   :  { %649 = vsyncpa [#allocation3], 1 }
 0x4a4   :  { %650 = vsyncpa [#allocation6], 1 }
 0x4a5   :  { %651 = vsyncpa [#allocation9], 1 }
 0x4a6   :  { %652 = vsyncpa [#allocation4], 1 }

</bundles_post_ra>
